<compile_context>
chip_gen: v7x
topology: tpu7x:2x2x1
jax: 0.10.0
libtpu: 0.0.40
codegen_flags: <defaults>
</compile_context>

<pallas_src>
import functools

import jax
import jax.numpy as jnp
from jax.experimental import pallas as pl
from jax.experimental.pallas import tpu as pltpu

_LANE = 128  # lane width / padding target for the feature dims


def _round_up(v, m):
    return (v + m - 1) // m * m


def _cdiv(a, b):
    return -(-a // b)


def _sublane_align(dtype):
    # Second-to-last block dim must be a multiple of the sublane tiling:
    # 8 for 32-bit, 16 for 16-bit, 32 for 8-bit dtypes.
    return max(8, 32 // jnp.dtype(dtype).itemsize)


def _head_kernel(x_ref, w1_ref, b1_ref, w2_ref, b2_ref, o_ref):
    # x tile [TB, in_p]; cast to bf16 in-kernel (no separate host cast pass).
    x = x_ref[...].astype(jnp.bfloat16)
    # dense: MXU bf16 operands, f32 accumulation.
    h = jnp.dot(x, w1_ref[...], preferred_element_type=jnp.float32)
    # bias add in f32, tanh in bf16 (bounded -> bf16 safe); bf16 h feeds the
    # second MXU pass directly without a separate full-tile cast.
    h = jnp.tanh((h + b1_ref[...]).astype(jnp.bfloat16))
    # out_proj: MXU bf16 operands, f32 accumulation; lane-dense store.
    y = jnp.dot(h, w2_ref[...], preferred_element_type=jnp.float32)
    o_ref[...] = (y + b2_ref[...]).astype(o_ref.dtype)


def prepare_head_params(w1, b1, w2, b2):
    """One-time (out-of-hot-path) parameter preprocessing.

    PyTorch Linear layout in:  w1 [hidden, in], b1 [hidden],
                               w2 [num_classes, hidden], b2 [num_classes].
    Returns kernel-ready (all feature dims zero-padded to 128 multiples):
        w1_t bf16 [in_p, hid_p], b1_r f32 [1, hid_p],
        w2_t bf16 [hid_p, n_pad], b2_r f32 [1, n_pad].
    Zero padding keeps the math exact: padded K rows / N cols contribute 0.
    """
    hidden, input_size = w1.shape
    num_classes = w2.shape[0]
    in_p = _round_up(input_size, _LANE)
    hid_p = _round_up(hidden, _LANE)
    n_pad = _round_up(num_classes, _LANE)   # keep at 128-mult; do NOT bump to 256

    w1_t = jnp.zeros((in_p, hid_p), jnp.bfloat16)
    w1_t = w1_t.at[:input_size, :hidden].set(
        jnp.asarray(w1, jnp.float32).T.astype(jnp.bfloat16))
    b1_r = jnp.zeros((1, hid_p), jnp.float32)
    b1_r = b1_r.at[0, :hidden].set(jnp.asarray(b1, jnp.float32))

    w2_t = jnp.zeros((hid_p, n_pad), jnp.bfloat16)
    w2_t = w2_t.at[:hidden, :num_classes].set(
        jnp.asarray(w2, jnp.float32).T.astype(jnp.bfloat16))
    b2_r = jnp.zeros((1, n_pad), jnp.float32)
    b2_r = b2_r.at[0, :num_classes].set(jnp.asarray(b2, jnp.float32))

    return w1_t, b1_r, w2_t, b2_r


def prediction_classification(x, params, num_classes, tb=512,
                              out_dtype=jnp.float32):
    """x: [B, input_size]; params: output of prepare_head_params()."""
    w1_t, b1_r, w2_t, b2_r = params
    B, input_size = x.shape
    in_p, hid_p = w1_t.shape
    n_pad = w2_t.shape[1]

    # Feature-dim lane padding: a no-op for 128-multiple input sizes (the common
    # case -> zero host passes over x).  Otherwise one zero-pad pass; w1's padded
    # K rows are zero so pad values cannot leak into the result.
    if in_p != input_size:
        x = jnp.pad(x, ((0, 0), (0, in_p - input_size)))

    x_bytes = jnp.dtype(x.dtype).itemsize
    out_bytes = jnp.dtype(out_dtype).itemsize
    align = max(_sublane_align(x.dtype), _sublane_align(out_dtype))

    # --- VMEM budget (re-derived for v7x's 64 MiB; also covers v5e/v6e) ------
    # Weights/biases single-buffered (constant index_map); x and out blocks are
    # double-buffered by the pipeline; headroom for f32 accumulators / bf16 h.
    weight_bytes = (in_p * hid_p + hid_p * n_pad) * 2 + (hid_p + n_pad) * 4
    per_row = 2 * in_p * x_bytes + 2 * n_pad * out_bytes + hid_p * (4 + 2)
    budget = 44 << 20
    if budget > weight_bytes + align * per_row:
        tb_fit = max(align, int((budget - weight_bytes) // per_row) // align * align)
    else:
        tb_fit = align  # weights dominate; see TODO(synk) on K-axis split above

    if B <= align:
        TB = B                                   # one full-batch block
    else:
        # Cap so the grid has >= 2 steps -> v7x megacore actually engages.
        TB = min(tb, tb_fit, _round_up(_cdiv(B, 2), align))
        TB = max(align, (TB // align) * align)

    grid = (_cdiv(B, TB),)                        # ragged last block; no batch pad
    vmem_limit = int(min(max(weight_bytes + TB * per_row + (4 << 20), 16 << 20),
                         64 << 20))

    resident = dict(pipeline_mode=pl.Buffered(1))  # constant-index -> 1 buffer

    out = pl.pallas_call(
        _head_kernel,
        out_shape=jax.ShapeDtypeStruct((B, n_pad), out_dtype),
        grid=grid,
        in_specs=[
            pl.BlockSpec((TB, in_p), lambda i: (i, 0)),                  # x (tiled)
            pl.BlockSpec((in_p, hid_p), lambda i: (0, 0), **resident),   # w1
            pl.BlockSpec((1, hid_p), lambda i: (0, 0), **resident),      # b1
            pl.BlockSpec((hid_p, n_pad), lambda i: (0, 0), **resident),  # w2
            pl.BlockSpec((1, n_pad), lambda i: (0, 0), **resident),      # b2
        ],
        out_specs=pl.BlockSpec((TB, n_pad), lambda i: (i, 0)),
        compiler_params=pltpu.CompilerParams(
            dimension_semantics=("parallel",),
            vmem_limit_bytes=vmem_limit,
        ),
    )(x, w1_t, b1_r, w2_t, b2_r)

    return out[:, :num_classes]


def _init_linear(key, out_features, in_features):
    # PyTorch nn.Linear default init: U(-1/sqrt(fan_in), 1/sqrt(fan_in))
    kw, kb = jax.random.split(key)
    bound = 1.0 / jnp.sqrt(jnp.float32(in_features))
    w = jax.random.uniform(kw, (out_features, in_features), jnp.float32, -bound, bound)
    b = jax.random.uniform(kb, (out_features,), jnp.float32, -bound, bound)
    return w, b


if __name__ == "__main__":
    B = 8            # batch of sentence features (small demo shape)
    input_size = 32  # args.hidden_size (input_size defaults to it)
    hidden = 32      # args.hidden_size
    num_classes = 4  # args.num_classes

    key = jax.random.PRNGKey(0)
    kx, k1, k2 = jax.random.split(key, 3)

    x = jax.random.normal(kx, (B, input_size), jnp.float32)
    w1, b1 = _init_linear(k1, hidden, input_size)      # dense
    w2, b2 = _init_linear(k2, num_classes, hidden)     # out_proj

    # One-time parameter prep (outside the hot path).
    params = jax.block_until_ready(prepare_head_params(w1, b1, w2, b2))

    fn = jax.jit(functools.partial(prediction_classification,
                                   num_classes=num_classes))
    out = jax.block_until_ready(fn(x, params))
    assert out.shape == (B, num_classes)

    # Check vs a reference using the same bf16-operand / f32-accum / bf16-tanh
    # recipe as the kernel (documented precision choice for inference).
    xb = x.astype(jnp.bfloat16)
    w1b = w1.astype(jnp.bfloat16)
    w2b = w2.astype(jnp.bfloat16)
    h_ref = jnp.tanh(
        (jnp.dot(xb, w1b.T, preferred_element_type=jnp.float32) + b1
         ).astype(jnp.bfloat16))
    ref_bf16 = jnp.dot(h_ref, w2b.T, preferred_element_type=jnp.float32) + b2
    assert jnp.allclose(out, ref_bf16, atol=2e-2, rtol=2e-2)

    # Loose sanity check vs the full-f32 PyTorch-equivalent reference (eval mode).
    ref_f32 = jnp.tanh(x @ w1.T + b1) @ w2.T + b2
    assert jnp.allclose(out, ref_f32, atol=5e-2, rtol=5e-2)

    print("KERNEL_OK")
</pallas_src>

<mosaic_0001>
module attributes {stable_mosaic.version = 11 : i64} {
  func.func @_head_kernel(%arg0: i32, %arg1: memref<8x128xf32, #tpu.memory_space<vmem>>, %arg2: memref<128x128xbf16, #tpu.memory_space<vmem>>, %arg3: memref<1x128xf32, #tpu.memory_space<vmem>>, %arg4: memref<128x128xbf16, #tpu.memory_space<vmem>>, %arg5: memref<1x128xf32, #tpu.memory_space<vmem>>, %arg6: memref<8x128xf32, #tpu.memory_space<vmem>>) attributes {dimension_semantics = [#tpu.dimension_semantics<parallel>], iteration_bounds = array<i64: 1>, scalar_prefetch = 0 : i64, scratch_operands = 0 : i64, tpu.core_type = #tpu.core_type<tc>, window_params = [{transform_indices = @transform_0, window_bounds = array<i64: 8, 128>}, {pipeline_mode = #tpu.pipeline_mode<synchronous>, transform_indices = @transform_1, window_bounds = array<i64: 128, 128>}, {pipeline_mode = #tpu.pipeline_mode<synchronous>, transform_indices = @transform_2, window_bounds = array<i64: 1, 128>}, {pipeline_mode = #tpu.pipeline_mode<synchronous>, transform_indices = @transform_3, window_bounds = array<i64: 128, 128>}, {pipeline_mode = #tpu.pipeline_mode<synchronous>, transform_indices = @transform_4, window_bounds = array<i64: 1, 128>}, {transform_indices = @transform_5, window_bounds = array<i64: 8, 128>}]} {
    %c0 = arith.constant 0 : index
    %c0_0 = arith.constant 0 : index
    %0 = vector.load %arg1[%c0, %c0_0] : memref<8x128xf32, #tpu.memory_space<vmem>>, vector<8x128xf32>
    %1 = arith.truncf %0 : vector<8x128xf32> to vector<8x128xbf16>
    %c0_1 = arith.constant 0 : index
    %c0_2 = arith.constant 0 : index
    %2 = vector.load %arg2[%c0_1, %c0_2] : memref<128x128xbf16, #tpu.memory_space<vmem>>, vector<128x128xbf16>
    %cst = arith.constant dense<0.000000e+00> : vector<8x128xf32>
    %3 = tpu.matmul %1, %2, %cst {dimension_numbers = #tpu.dot_dimension_numbers<[1], [0], [0], [1], [0, 0, 1, 1], [], []>} : vector<8x128xbf16>, vector<128x128xbf16>, vector<8x128xf32> -> vector<8x128xf32>
    %c0_3 = arith.constant 0 : index
    %c0_4 = arith.constant 0 : index
    %4 = vector.load %arg3[%c0_3, %c0_4] : memref<1x128xf32, #tpu.memory_space<vmem>>, vector<1x128xf32>
    %5 = vector.broadcast %4 : vector<1x128xf32> to vector<8x128xf32>
    %6 = arith.addf %3, %5 : vector<8x128xf32>
    %7 = arith.truncf %6 : vector<8x128xf32> to vector<8x128xbf16>
    %8 = math.tanh %7 : vector<8x128xbf16>
    %c0_5 = arith.constant 0 : index
    %c0_6 = arith.constant 0 : index
    %9 = vector.load %arg4[%c0_5, %c0_6] : memref<128x128xbf16, #tpu.memory_space<vmem>>, vector<128x128xbf16>
    %cst_7 = arith.constant dense<0.000000e+00> : vector<8x128xf32>
    %10 = tpu.matmul %8, %9, %cst_7 {dimension_numbers = #tpu.dot_dimension_numbers<[1], [0], [0], [1], [0, 0, 1, 1], [], []>} : vector<8x128xbf16>, vector<128x128xbf16>, vector<8x128xf32> -> vector<8x128xf32>
    %c0_8 = arith.constant 0 : index
    %c0_9 = arith.constant 0 : index
    %11 = vector.load %arg5[%c0_8, %c0_9] : memref<1x128xf32, #tpu.memory_space<vmem>>, vector<1x128xf32>
    %12 = vector.broadcast %11 : vector<1x128xf32> to vector<8x128xf32>
    %13 = arith.addf %10, %12 : vector<8x128xf32>
    %c0_10 = arith.constant 0 : index
    %c0_11 = arith.constant 0 : index
    %14 = vector.load %arg6[%c0_10, %c0_11] : memref<8x128xf32, #tpu.memory_space<vmem>>, vector<8x128xf32>
    tpu.vector_store %arg6[%c0_10, %c0_11], %13 {strides = array<i32>} : memref<8x128xf32, #tpu.memory_space<vmem>>, vector<8x128xf32>,
    return
  }
  func.func @transform_0(%arg0: i32) -> (i32, i32) {
    %c0_i32 = arith.constant 0 : i32
    %c0_i32_0 = arith.constant 0 : i32
    return %arg0, %c0_i32 : i32, i32
  }
  func.func @transform_1(%arg0: i32) -> (i32, i32) {
    %c0_i32 = arith.constant 0 : i32
    %c0_i32_0 = arith.constant 0 : i32
    %c0_i32_1 = arith.constant 0 : i32
    return %c0_i32, %c0_i32_0 : i32, i32
  }
  func.func @transform_2(%arg0: i32) -> (i32, i32) {
    %c0_i32 = arith.constant 0 : i32
    %c0_i32_0 = arith.constant 0 : i32
    %c0_i32_1 = arith.constant 0 : i32
    return %c0_i32, %c0_i32_0 : i32, i32
  }
  func.func @transform_3(%arg0: i32) -> (i32, i32) {
    %c0_i32 = arith.constant 0 : i32
    %c0_i32_0 = arith.constant 0 : i32
    %c0_i32_1 = arith.constant 0 : i32
    return %c0_i32, %c0_i32_0 : i32, i32
  }
  func.func @transform_4(%arg0: i32) -> (i32, i32) {
    %c0_i32 = arith.constant 0 : i32
    %c0_i32_0 = arith.constant 0 : i32
    %c0_i32_1 = arith.constant 0 : i32
    return %c0_i32, %c0_i32_0 : i32, i32
  }
  func.func @transform_5(%arg0: i32) -> (i32, i32) {
    %c0_i32 = arith.constant 0 : i32
    %c0_i32_0 = arith.constant 0 : i32
    return %arg0, %c0_i32 : i32, i32
  }
}

</mosaic_0001>

<bundles_post_ra>
// kernel: prediction_classification.1
= control target key start
LH: loop header
LB: loop body
LE: loop exit
PB: predicated region body
PF: predicated region fallthrough
CT: control target
= control target key end

     0   :  { %10 = vsyncpa [#allocation3], 0  ;;  %s502_s0 = inlined_call_operand.vmem [shape: f32[8,128], index: 0, kind: input, shape index: {}]   ;;  %s503_s1 = inlined_call_operand.hbm [shape: bf16[128,128], index: 1, kind: input, shape index: {}]   ;;  %s504_s2 = inlined_call_operand.vmem [shape: f32[1,128], index: 2, kind: input, shape index: {}]   ;;  %s505_s3 = inlined_call_operand.hbm [shape: bf16[128,128], index: 3, kind: input, shape index: {}]   ;;  %s506_s4 = inlined_call_operand.vmem [shape: f32[1,128], index: 4, kind: input, shape index: {}]   ;;  %s507_s5 = inlined_call_operand.vmem [shape: f32[8,128], index: 5, kind: output, shape index: {}]  }
   0x1   :  { %11 = vsyncpa [#allocation5], 0  ;;  %s430_s18 = smov [#allocation2]   ;;  %s382_s22 = scalar_lea.hbm %s503_s1, 1024 }
   0x2   :  { %s19_s19 = sshll.u32 %s430_s18, 4  ;;  %p383_p0 = scmp.ne.s32.totalorder %s503_s1, %s382_s22  ;;  %s20_s19 = int_to_ptr.vmem [resolvable:$true] %s19_s19 }
   0x3   :  { %p386_p1 = scmp.lt.u32.totalorder %s382_s22, %s503_s1 }
   0x5   :  { %p388_p2 = pnand %p386_p1, %p383_p0 }
   0x7   :  { %391 = shalt.err (!%p388_p2)
}
   0x8   :  { %s392_s27 = scalar_lea.vmem %s20_s19, 1024  ;;  %p397_p4 = scmp.lt.s32.totalorder %s20_s19, %s20_s19 }
   0x9   :  { %p393_p3 = scmp.ne.s32.totalorder %s20_s19, %s392_s27  ;;  %p398_p5 = scmp.lt.s32.totalorder %s392_s27, %s392_s27 }
   0xb   :  { %p399_p6 = por %p398_p5, %p397_p4 }
   0xd   :  { %p400_p7 = pnand %p399_p6, %p393_p3 }
   0xf   :  { %403 = shalt.err (!%p400_p7)
}
  0x10   :  { %s431_s28 = smov 64   ;;  %s432_s29 = smov 4  }
  0x11   :  { %25 = dma.hbm_to_vmem [thread:$0]  %s503_s1, 1024, %s20_s19, [#allocation3], %s431_s28, %s431_s28, %s432_s29  }
  0x12   :  { %s433_s7 = smov [#allocation4]   ;;  %s404_s11 = scalar_lea.hbm %s505_s3, 1024 }
  0x13   :  { %s33_s8 = sshll.u32 %s433_s7, 4  ;;  %p405_p8 = scmp.ne.s32.totalorder %s505_s3, %s404_s11  ;;  %s34_s8 = int_to_ptr.vmem [resolvable:$true] %s33_s8 }
  0x14   :  { %p408_p9 = scmp.lt.u32.totalorder %s404_s11, %s505_s3 }
  0x16   :  { %p410_p10 = pnand %p408_p9, %p405_p8 }
  0x18   :  { %413 = shalt.err (!%p410_p10)
}
  0x19   :  { %s414_s16 = scalar_lea.vmem %s34_s8, 1024  ;;  %p419_p12 = scmp.lt.s32.totalorder %s34_s8, %s34_s8 }
  0x1a   :  { %p415_p11 = scmp.ne.s32.totalorder %s34_s8, %s414_s16  ;;  %p420_p13 = scmp.lt.s32.totalorder %s414_s16, %s414_s16 }
  0x1c   :  { %p421_p0 = por %p420_p13, %p419_p12 }
  0x1e   :  { %p422_p1 = pnand %p421_p0, %p415_p11 }
  0x20   :  { %425 = shalt.err (!%p422_p1)
}
  0x21   :  { %39 = dma.hbm_to_vmem [thread:$0]  %s505_s3, 1024, %s34_s8, [#allocation5], %s431_s28, %s431_s28, %s432_s29  }
  0x22   :  { %426 = dma.done.wait [#allocation3], 1024  }
  0x23   :  { %427 = vsyncadd [#allocation3], 4294966272 }
  0x24   :  { %428 = dma.done.wait [#allocation5], 1024  }
  0x25   :  { %429 = vsyncadd [#allocation5], 4294966272  ;;  %v434_v0 = vmov 0.0   ;;  %vm435_vm0 = vmmov 0   ;;  %v364_v1 = vld [vmem:[#allocation2] sm:$0xff]   ;;  %v365_v2 = vld [vmem:[#allocation2 + $0x8] sm:$0xff]  }
  0x26   :  { %318 = vmatprep.subr.bf16.mxu0 %v434_v0  ;;  %334 = vmatprep.mubr.msk.bf16.mxu0 %vm435_vm0, %v434_v0  ;;  %v366_v3 = vld [vmem:[#allocation2 + $0x10] sm:$0xff]   ;;  %v372_v4 = vld [vmem:[#allocation4] sm:$0xff]   ;;  %v367_v5 = vld [vmem:[#allocation2 + $0x18] sm:$0xff]  }
  0x27   :  { %338 = vmatprep.subr.bf16.mxu1 %v434_v0  ;;  %354 = vmatprep.mubr.msk.bf16.mxu1 %vm435_vm0, %v434_v0  ;;  %v373_v6 = vld [vmem:[#allocation4 + $0x8] sm:$0xff]   ;;  %v368_v7 = vld [vmem:[#allocation2 + $0x20] sm:$0xff]   ;;  %v374_v8 = vld [vmem:[#allocation4 + $0x10] sm:$0xff]  }
  0x28   :  { %319 = vmatpush3.bf16.msra.mxu0 %v364_v1  ;;  %339 = vmatpush3.bf16.msra.mxu1 %v372_v4  ;;  %v369_v9 = vld [vmem:[#allocation2 + $0x28] sm:$0xff]   ;;  %v375_v10 = vld [vmem:[#allocation4 + $0x18] sm:$0xff]   ;;  %v370_v11 = vld [vmem:[#allocation2 + $0x30] sm:$0xff]  }
  0x29   :  { %320 = vmatprep.subr.bf16.mxu0 %v434_v0  ;;  %340 = vmatprep.subr.bf16.mxu1 %v434_v0  ;;  %v371_v12 = vld [vmem:[#allocation2 + $0x38] sm:$0xff]   ;;  %v49_v13 = vld [vmem:[%s502_s0] sm:$0xff]  ;;  %v377_v16 = vld [vmem:[#allocation4 + $0x28] sm:$0xff]  }
  0x2a   :  { %v50_v14 = vpack.c.bf16 %v49_v13, %v49_v13  ;;  %v376_v15 = vld [vmem:[#allocation4 + $0x20] sm:$0xff]   ;;  %v378_v17 = vld [vmem:[#allocation4 + $0x30] sm:$0xff]   ;;  %v379_v18 = vld [vmem:[#allocation4 + $0x38] sm:$0xff]  }
  0x2b   :  { %v282_v19 = vld [vmem:[%s504_s2] ss:$0 sm:$0xff] }
  0x2c   :  { %321 = vmatpush3.bf16.msra.mxu0 %v365_v2  ;;  %341 = vmatpush3.bf16.msra.mxu1 %v373_v6  ;;  %v291_v27 = vld [vmem:[%s506_s4] ss:$0 sm:$0xff] }
  0x2d   :  { %322 = vmatprep.subr.bf16.mxu0 %v434_v0  ;;  %342 = vmatprep.subr.bf16.mxu1 %v434_v0 }
  0x30   :  { %323 = vmatpush3.bf16.msra.mxu0 %v366_v3  ;;  %343 = vmatpush3.bf16.msra.mxu1 %v374_v8 }
  0x31   :  { %324 = vmatprep.subr.bf16.mxu0 %v434_v0  ;;  %344 = vmatprep.subr.bf16.mxu1 %v434_v0 }
  0x34   :  { %325 = vmatpush3.bf16.msra.mxu0 %v367_v5  ;;  %345 = vmatpush3.bf16.msra.mxu1 %v375_v10 }
  0x35   :  { %326 = vmatprep.subr.bf16.mxu0 %v434_v0  ;;  %346 = vmatprep.subr.bf16.mxu1 %v434_v0 }
  0x38   :  { %327 = vmatpush3.bf16.msra.mxu0 %v368_v7  ;;  %347 = vmatpush3.bf16.msra.mxu1 %v376_v15 }
  0x39   :  { %328 = vmatprep.subr.bf16.mxu0 %v434_v0  ;;  %348 = vmatprep.subr.bf16.mxu1 %v434_v0 }
  0x3c   :  { %329 = vmatpush3.bf16.msra.mxu0 %v369_v9  ;;  %349 = vmatpush3.bf16.msra.mxu1 %v377_v16 }
  0x3d   :  { %330 = vmatprep.subr.bf16.mxu0 %v434_v0  ;;  %350 = vmatprep.subr.bf16.mxu1 %v434_v0 }
  0x40   :  { %331 = vmatpush3.bf16.msra.mxu0 %v370_v11  ;;  %351 = vmatpush3.bf16.msra.mxu1 %v378_v17 }
  0x41   :  { %332 = vmatprep.subr.bf16.mxu0 %v434_v0  ;;  %352 = vmatprep.subr.bf16.mxu1 %v434_v0 }
  0x44   :  { %333 = vmatpush3.bf16.msra.mxu0 %v371_v12  ;;  %353 = vmatpush3.bf16.msra.mxu1 %v379_v18 }
  0x47   :  { %335 = vmatmul.mubr.bf16.vlgmr.msra.gmra.mrb[0].mxu0 %v50_v14 }
 0x11a   :  { %v156_v20 = vpop.f32.mrb[0].mxu0 }
 0x11b   :  { %v157_v21 = vadd.f32 %v282_v19, %v156_v20  ;;  %v336_v22 = vpop.f32.mrb[1].mxu0 }
 0x11c   :  { %v159_v23 = vpop.f32.mrb[2].mxu0 }
 0x11d   :  { %v162_v24 = vpack.c.bf16 %v157_v21, %v157_v21  ;;  %v337_v25 = vpop.f32.mrb[3].mxu0 }
 0x11f   :  { %380 = vtanh.bf16 %v162_v24 }
 0x12a   :  { %v381_v26 = vpop.eup %380 }
 0x12b   :  { %355 = vmatmul.mubr.bf16.vlgmr.msra.gmra.mrb[0].mxu1 %v381_v26 }
 0x1fe   :  { %v269_v28 = vpop.f32.mrb[0].mxu1 }
 0x1ff   :  { %v270_v29 = vadd.f32 %v291_v27, %v269_v28  ;;  %v356_v30 = vpop.f32.mrb[1].mxu1 }
 0x200   :  { %v272_v31 = vpop.f32.mrb[2].mxu1 }
 0x201   :  { %275 = vst [vmem:[%s507_s5] sm:$0xff] %v270_v29  ;;  %v357_v32 = vpop.f32.mrb[3].mxu1 }
 0x202   :  { %280 = vsyncpa [#allocation3], 1 }
 0x203   :  { %281 = vsyncpa [#allocation5], 1 }

</bundles_post_ra>
